<compile_context>
chip_gen: v6e
topology: v6e:2x2x1
jax: 0.10.0
libtpu: 0.0.40
codegen_flags: <defaults>
</compile_context>

<pallas_src>
import jax
import jax.numpy as jnp
from jax import lax
from jax.experimental import pallas as pl
from jax.experimental.pallas import tpu as pltpu

# ----------------------------- static config -------------------------------
B = 2
C_IN = 16
C_OUT = 32
L_IN = 16
K = 3
STRIDE = 2
SE_RED = 16
SE_C = C_OUT // SE_RED
FIRST_BLOCK = True
BN_EPS = 1e-5

# conv_kx1 padding: padding = k - stride, split left/right
PAD1 = K - STRIDE
PL1, PR1 = PAD1 // 2, PAD1 - PAD1 // 2
PAD2 = K - 1
PL2, PR2 = PAD2 // 2, PAD2 - PAD2 // 2
L_OUT = (L_IN + PAD1 - K) // STRIDE + 1        # conv1 (strided) output length
ROWS = B * L_OUT                               # batch fused into the sublane axis

# The in-kernel tap construction below is specialized for this block config.
assert K == 3 and STRIDE == 2
assert PL1 == 0 and PR1 == 1 and PL2 == 1 and PR2 == 1
assert L_IN // STRIDE == L_OUT                 # shortcut maxpool length must match conv path
assert (L_OUT & (L_OUT - 1)) == 0              # power of 2 -> boundary masks via bitwise AND
assert 4 + 2 * SE_C == 8                       # pvec fits exactly one (8,32) f32 vreg


# ------------------------------- kernel ------------------------------------
def wrn_block_kernel(x_ref, pvec_ref, pw_ref, o_ref):
    # x_ref    : (2, B*L_OUT, C_IN)  f32  -- stride-2 phases, batches stacked in sublanes
    # pvec_ref : (8, C_OUT)          f32  -- [a1|0, b1|0, a2, b2, sw1(2), sw2(2)]
    # pw_ref   : (K*(C_IN+C_OUT), C_OUT) bf16 -- [im2col w1 ; im2col w2]
    # o_ref    : (B*L_OUT, C_OUT)    f32  -- channels-last, batches stacked
    f32 = jnp.float32
    bf16 = jnp.bfloat16

    # --- unpack packed parameter buffers (static, tile-aligned slices) ---
    a1 = pvec_ref[0:1, 0:C_IN]
    b1 = pvec_ref[1:2, 0:C_IN]
    a2 = pvec_ref[2:3, :]
    b2 = pvec_ref[3:4, :]
    sw1 = pvec_ref[4:4 + SE_C, :]                      # (SE_C, C_OUT)
    sw2 = pvec_ref[4 + SE_C:4 + 2 * SE_C, :]           # (SE_C, C_OUT)
    w1 = pw_ref[0:K * C_IN, :]                         # (48, 32)  bf16
    w2 = pw_ref[K * C_IN:K * (C_IN + C_OUT), :]        # (96, 32)  bf16

    # --- batch-boundary masks on the fused (B*L_OUT) sublane axis ---
    row = lax.broadcasted_iota(jnp.int32, (ROWS, 1), 0)
    in_batch = row & (L_OUT - 1)
    first_row = in_batch == 0                # rows 0, 8   (left pad of each batch)
    last_row = in_batch == (L_OUT - 1)       # rows 7, 15  (right pad of each batch)
    m0 = (row < L_OUT).astype(f32)           # batch-0 selector
    m1 = 1.0 - m0                            # batch-1 selector

    # --- BN1 + ReLU on the two stride-2 phases (both batches at once) ---
    t0 = jnp.maximum(x_ref[0] * a1 + b1, 0.0)          # h[2i]
    t1 = jnp.maximum(x_ref[1] * a1 + b1, 0.0)          # h[2i+1]
    # tap h[2i+2] = next even row within the batch; zero at batch end (= right pad)
    t2 = jnp.where(last_row, 0.0, pltpu.roll(t0, ROWS - 1, 0))

    # --- conv1 (kx1, stride 2): ONE im2col MXU matmul (bf16 operands), BN2+ReLU ---
    # TODO(synk): training-mode dropout mask / BatchNorm batch statistics are not
    # implemented; this kernel reproduces eval/inference semantics.
    cols1 = jnp.concatenate([t0, t1, t2], axis=-1).astype(bf16)   # (ROWS, K*C_IN)
    h = jnp.dot(cols1, w1, preferred_element_type=f32)            # (ROWS, C_OUT)
    h = jnp.maximum(h * a2 + b2, 0.0)

    # --- conv2 (kx1, stride 1): taps via sublane rolls + boundary zero-masks ---
    c0 = jnp.where(first_row, 0.0, pltpu.roll(h, 1, 0))           # padded2[i]
    c2 = jnp.where(last_row, 0.0, pltpu.roll(h, ROWS - 1, 0))     # padded2[i+2]
    cols2 = jnp.concatenate([c0, h, c2], axis=-1).astype(bf16)    # (ROWS, K*C_OUT)
    out = jnp.dot(cols2, w2, preferred_element_type=f32)          # (ROWS, C_OUT)

    # --- squeeze & excitation (per batch; VPU/XLU only, no MXU push/pop) ---
    inv_l = 1.0 / L_OUT
    se0 = jnp.sum(out * m0, axis=0, keepdims=True) * inv_l        # (1, C_OUT)
    se1 = jnp.sum(out * m1, axis=0, keepdims=True) * inv_l
    e0 = jnp.maximum(jnp.sum(se0 * sw1, axis=1, keepdims=True), 0.0)   # (SE_C, 1)
    e1 = jnp.maximum(jnp.sum(se1 * sw1, axis=1, keepdims=True), 0.0)
    g0 = jax.nn.sigmoid(jnp.sum(e0 * sw2, axis=0, keepdims=True))      # (1, C_OUT)
    g1 = jax.nn.sigmoid(jnp.sum(e1 * sw2, axis=0, keepdims=True))
    out = out * (m0 * g0 + m1 * g1)

    # --- shortcut: MaxPool1d(stride=2) = VPU max of the two phases,
    #     zero channel pad = lane concat, then residual add ---
    if FIRST_BLOCK:
        pooled = jnp.maximum(t0, t1)          # first_block: shortcut sees relu(bn1(x))
    else:
        pooled = jnp.maximum(x_ref[0], x_ref[1])
    if C_IN == C_OUT:
        sc = pooled
    else:
        sc = jnp.concatenate([pooled, jnp.zeros((ROWS, C_OUT - C_IN), f32)], axis=-1)

    o_ref[...] = (out + sc).astype(o_ref.dtype)


# ------------------------------ wrappers ------------------------------------
def pack_params(p):
    """One-time parameter packing: BN fold, im2col conv-weight layout, SE squeeze.
    Kept OUT of the jitted per-call path so each inference call only ships two
    small constant buffers to the kernel (plus the activations)."""
    inv1 = p['g1'] / jnp.sqrt(p['v1'] + BN_EPS)
    inv2 = p['g2'] / jnp.sqrt(p['v2'] + BN_EPS)
    a1 = jnp.pad(inv1, (0, C_OUT - C_IN))
    b1 = jnp.pad(p['b1'] - p['m1'] * inv1, (0, C_OUT - C_IN))
    a2 = inv2
    b2 = p['b2'] - p['m2'] * inv2
    sw1 = p['sw1'][:, :, 0]                              # (SE_C, C_OUT)
    sw2 = jnp.transpose(p['sw2'][:, :, 0], (1, 0))       # (SE_C, C_OUT)
    pvec = jnp.concatenate([a1[None], b1[None], a2[None], b2[None], sw1, sw2],
                           axis=0).astype(jnp.float32)   # (8, C_OUT)
    # im2col-packed weights (w[k*C + c, o] = W[o, c, k]); bf16 for single-pass MXU.
    w1 = jnp.transpose(p['w1'], (2, 1, 0)).reshape(K * C_IN, C_OUT)
    w2 = jnp.transpose(p['w2'], (2, 1, 0)).reshape(K * C_OUT, C_OUT)
    pw = jnp.concatenate([w1, w2], axis=0).astype(jnp.bfloat16)   # (K*(C_IN+C_OUT), C_OUT)
    return pvec, pw


@jax.jit
def wrn_block_pallas(x_ncl, pvec, pw):
    # NCL -> channels-last, stride-2 phase split, batch->sublane stacking:
    # collapsed into ONE XLA fusion producing a single kernel input.
    x_ph = jnp.transpose(
        x_ncl.astype(jnp.float32).reshape(B, C_IN, L_OUT, STRIDE),
        (3, 0, 2, 1)).reshape(STRIDE, ROWS, C_IN)        # (2, B*L_OUT, C_IN)

    # Single kernel invocation (no grid): whole problem fits trivially in VMEM,
    # and per-grid-step / per-core overhead would dominate this µs-scale kernel.
    out = pl.pallas_call(
        wrn_block_kernel,
        out_shape=jax.ShapeDtypeStruct((ROWS, C_OUT), jnp.float32),
        in_specs=[pl.BlockSpec(memory_space=pltpu.MemorySpace.VMEM)] * 3,
        out_specs=pl.BlockSpec(memory_space=pltpu.MemorySpace.VMEM),
    )(x_ph, pvec, pw)

    # Back to the module's NCL layout: (B, C_OUT, L_OUT).
    return jnp.transpose(out.reshape(B, L_OUT, C_OUT), (0, 2, 1))


# -------------------------- pure-JAX reference ------------------------------
@jax.jit
def wrn_block_reference(x_ncl, p):
    dn = ('NCH', 'OIH', 'NCH')
    hp = lax.Precision.HIGHEST

    def bn(v, g, b, m, var):
        return (v - m[None, :, None]) / jnp.sqrt(var[None, :, None] + BN_EPS) \
               * g[None, :, None] + b[None, :, None]

    h = jax.nn.relu(bn(x_ncl, p['g1'], p['b1'], p['m1'], p['v1']))
    t = jnp.pad(h, ((0, 0), (0, 0), (PL1, PR1)))
    out = lax.conv_general_dilated(t, p['w1'], (STRIDE,), 'VALID',
                                   dimension_numbers=dn, precision=hp)
    out = jax.nn.relu(bn(out, p['g2'], p['b2'], p['m2'], p['v2']))
    t = jnp.pad(out, ((0, 0), (0, 0), (PL2, PR2)))
    out = lax.conv_general_dilated(t, p['w2'], (1,), 'VALID',
                                   dimension_numbers=dn, precision=hp)
    se = jnp.mean(out, axis=2, keepdims=True)
    se = jax.nn.relu(lax.conv_general_dilated(se, p['sw1'], (1,), 'VALID',
                                              dimension_numbers=dn, precision=hp))
    se = jax.nn.sigmoid(lax.conv_general_dilated(se, p['sw2'], (1,), 'VALID',
                                                 dimension_numbers=dn, precision=hp))
    out = out * se
    sc = h if FIRST_BLOCK else x_ncl
    if STRIDE > 1:
        sc = lax.reduce_window(sc, -jnp.inf, lax.max, (1, 1, STRIDE),
                               (1, 1, STRIDE), 'VALID')
    if C_OUT > C_IN:
        sc = jnp.pad(sc, ((0, 0), (0, C_OUT - C_IN), (0, 0)))
    return out + sc


# ----------------------------- parameters -----------------------------------
def make_params(key):
    ks = jax.random.split(key, 12)
    p = {}
    p['g1'] = jax.random.uniform(ks[0], (C_IN,), jnp.float32, 0.8, 1.2)
    p['b1'] = jax.random.normal(ks[1], (C_IN,), jnp.float32) * 0.1
    p['m1'] = jax.random.normal(ks[2], (C_IN,), jnp.float32) * 0.1
    p['v1'] = jax.random.uniform(ks[3], (C_IN,), jnp.float32, 0.5, 1.5)
    p['w1'] = jax.random.normal(ks[4], (C_OUT, C_IN, K), jnp.float32) * 0.1
    p['g2'] = jax.random.uniform(ks[5], (C_OUT,), jnp.float32, 0.8, 1.2)
    p['b2'] = jax.random.normal(ks[6], (C_OUT,), jnp.float32) * 0.1
    p['m2'] = jax.random.normal(ks[7], (C_OUT,), jnp.float32) * 0.1
    p['v2'] = jax.random.uniform(ks[8], (C_OUT,), jnp.float32, 0.5, 1.5)
    p['w2'] = jax.random.normal(ks[9], (C_OUT, C_OUT, K), jnp.float32) * 0.1
    p['sw1'] = jax.random.normal(ks[10], (SE_C, C_OUT, 1), jnp.float32) * 0.1
    p['sw2'] = jax.random.normal(ks[11], (C_OUT, SE_C, 1), jnp.float32) * 0.1
    return p


if __name__ == "__main__":
    key = jax.random.PRNGKey(0)
    kx, kp = jax.random.split(key)
    x = jax.random.normal(kx, (B, C_IN, L_IN), jnp.float32)   # NCL, like torch Conv1d input
    params = make_params(kp)

    pvec, pw = pack_params(params)        # one-time prep, outside the inference path

    out = jax.block_until_ready(wrn_block_pallas(x, pvec, pw))
    ref = jax.block_until_ready(wrn_block_reference(x, params))

    assert out.shape == (B, C_OUT, L_OUT), out.shape
    err = float(jnp.max(jnp.abs(out - ref)))
    # bf16 MXU operands (deliberate, per perf review) -> slightly looser tolerance.
    if not bool(jnp.allclose(out, ref, rtol=5e-2, atol=5e-2)):
        raise AssertionError(f"Pallas kernel mismatch vs reference, max abs err = {err}")
    print("KERNEL_OK")
</pallas_src>

<mosaic_0001>
module attributes {stable_mosaic.version = 11 : i64} {
  func.func @wrn_block_kernel(%arg0: memref<2x16x16xf32, #tpu.memory_space<vmem>>, %arg1: memref<8x32xf32, #tpu.memory_space<vmem>>, %arg2: memref<144x32xbf16, #tpu.memory_space<vmem>>, %arg3: memref<16x32xf32, #tpu.memory_space<vmem>>) attributes {dimension_semantics = [], scalar_prefetch = 0 : i64, scratch_operands = 0 : i64, tpu.core_type = #tpu.core_type<tc>} {
    %c0 = arith.constant 0 : index
    %c0_0 = arith.constant 0 : index
    %0 = vector.load %arg1[%c0, %c0_0] : memref<8x32xf32, #tpu.memory_space<vmem>>, vector<1x16xf32>
    %c1 = arith.constant 1 : index
    %c0_1 = arith.constant 0 : index
    %1 = vector.load %arg1[%c1, %c0_1] : memref<8x32xf32, #tpu.memory_space<vmem>>, vector<1x16xf32>
    %c2 = arith.constant 2 : index
    %c0_2 = arith.constant 0 : index
    %2 = vector.load %arg1[%c2, %c0_2] : memref<8x32xf32, #tpu.memory_space<vmem>>, vector<1x32xf32>
    %c3 = arith.constant 3 : index
    %c0_3 = arith.constant 0 : index
    %3 = vector.load %arg1[%c3, %c0_3] : memref<8x32xf32, #tpu.memory_space<vmem>>, vector<1x32xf32>
    %c4 = arith.constant 4 : index
    %c0_4 = arith.constant 0 : index
    %4 = vector.load %arg1[%c4, %c0_4] : memref<8x32xf32, #tpu.memory_space<vmem>>, vector<2x32xf32>
    %c6 = arith.constant 6 : index
    %c0_5 = arith.constant 0 : index
    %5 = vector.load %arg1[%c6, %c0_5] : memref<8x32xf32, #tpu.memory_space<vmem>>, vector<2x32xf32>
    %c0_6 = arith.constant 0 : index
    %c0_7 = arith.constant 0 : index
    %6 = vector.load %arg2[%c0_6, %c0_7] : memref<144x32xbf16, #tpu.memory_space<vmem>>, vector<48x32xbf16>
    %c48 = arith.constant 48 : index
    %c0_8 = arith.constant 0 : index
    %7 = vector.load %arg2[%c48, %c0_8] : memref<144x32xbf16, #tpu.memory_space<vmem>>, vector<96x32xbf16>
    %8 = tpu.iota {dimensions = array<i32: 0>} : vector<16x1xi32>
    %c7_i32 = arith.constant 7 : i32
    %9 = vector.broadcast %c7_i32 : i32 to vector<16x1xi32>
    %10 = arith.andi %8, %9 : vector<16x1xi32>
    %c0_i32 = arith.constant 0 : i32
    %11 = vector.broadcast %c0_i32 : i32 to vector<16x1xi32>
    %12 = arith.cmpi eq, %10, %11 : vector<16x1xi32>
    %c7_i32_9 = arith.constant 7 : i32
    %13 = vector.broadcast %c7_i32_9 : i32 to vector<16x1xi32>
    %14 = arith.cmpi eq, %10, %13 : vector<16x1xi32>
    %c8_i32 = arith.constant 8 : i32
    %15 = vector.broadcast %c8_i32 : i32 to vector<16x1xi32>
    %16 = arith.cmpi slt, %8, %15 : vector<16x1xi32>
    %17 = arith.extui %16 : vector<16x1xi1> to vector<16x1xi32>
    %18 = arith.sitofp %17 : vector<16x1xi32> to vector<16x1xf32>
    %cst = arith.constant 1.000000e+00 : f32
    %19 = vector.broadcast %cst : f32 to vector<16x1xf32>
    %20 = arith.subf %19, %18 : vector<16x1xf32>
    %c0_10 = arith.constant 0 : index
    %c0_11 = arith.constant 0 : index
    %c0_12 = arith.constant 0 : index
    %21 = vector.load %arg0[%c0_10, %c0_11, %c0_12] : memref<2x16x16xf32, #tpu.memory_space<vmem>>, vector<1x16x16xf32>
    %22 = vector.shape_cast %21 : vector<1x16x16xf32> to vector<16x16xf32>
    %23 = vector.broadcast %0 : vector<1x16xf32> to vector<16x16xf32>
    %24 = arith.mulf %22, %23 : vector<16x16xf32>
    %25 = vector.broadcast %1 : vector<1x16xf32> to vector<16x16xf32>
    %26 = arith.addf %24, %25 : vector<16x16xf32>
    %cst_13 = arith.constant 0.000000e+00 : f32
    %27 = vector.broadcast %cst_13 : f32 to vector<16x16xf32>
    %28 = arith.maximumf %26, %27 : vector<16x16xf32>
    %c1_14 = arith.constant 1 : index
    %c0_15 = arith.constant 0 : index
    %c0_16 = arith.constant 0 : index
    %29 = vector.load %arg0[%c1_14, %c0_15, %c0_16] : memref<2x16x16xf32, #tpu.memory_space<vmem>>, vector<1x16x16xf32>
    %30 = vector.shape_cast %29 : vector<1x16x16xf32> to vector<16x16xf32>
    %31 = vector.broadcast %0 : vector<1x16xf32> to vector<16x16xf32>
    %32 = arith.mulf %30, %31 : vector<16x16xf32>
    %33 = vector.broadcast %1 : vector<1x16xf32> to vector<16x16xf32>
    %34 = arith.addf %32, %33 : vector<16x16xf32>
    %cst_17 = arith.constant 0.000000e+00 : f32
    %35 = vector.broadcast %cst_17 : f32 to vector<16x16xf32>
    %36 = arith.maximumf %34, %35 : vector<16x16xf32>
    %c15_i32 = arith.constant 15 : i32
    %37 = tpu.dynamic_rotate %28 by %c15_i32 dim 0 : vector<16x16xf32>, i32 -> vector<16x16xf32>
    %cst_18 = arith.constant 0.000000e+00 : f32
    %38 = vector.shape_cast %14 : vector<16x1xi1> to vector<16x1xi1>
    %39 = vector.broadcast %38 : vector<16x1xi1> to vector<16x16xi1>
    %40 = vector.broadcast %cst_18 : f32 to vector<16x16xf32>
    %41 = arith.select %39, %40, %37 : vector<16x16xi1>, vector<16x16xf32>
    %42 = tpu.concatenate %28, %36, %41 in 1 : vector<16x16xf32>, vector<16x16xf32>, vector<16x16xf32> -> vector<16x48xf32>
    %43 = arith.truncf %42 : vector<16x48xf32> to vector<16x48xbf16>
    %cst_19 = arith.constant dense<0.000000e+00> : vector<16x32xf32>
    %44 = tpu.matmul %43, %6, %cst_19 {dimension_numbers = #tpu.dot_dimension_numbers<[1], [0], [0], [1], [0, 0, 1, 1], [], []>} : vector<16x48xbf16>, vector<48x32xbf16>, vector<16x32xf32> -> vector<16x32xf32>
    %45 = vector.broadcast %2 : vector<1x32xf32> to vector<16x32xf32>
    %46 = arith.mulf %44, %45 : vector<16x32xf32>
    %47 = vector.broadcast %3 : vector<1x32xf32> to vector<16x32xf32>
    %48 = arith.addf %46, %47 : vector<16x32xf32>
    %cst_20 = arith.constant 0.000000e+00 : f32
    %49 = vector.broadcast %cst_20 : f32 to vector<16x32xf32>
    %50 = arith.maximumf %48, %49 : vector<16x32xf32>
    %c1_i32 = arith.constant 1 : i32
    %51 = tpu.dynamic_rotate %50 by %c1_i32 dim 0 : vector<16x32xf32>, i32 -> vector<16x32xf32>
    %cst_21 = arith.constant 0.000000e+00 : f32
    %52 = vector.shape_cast %12 : vector<16x1xi1> to vector<16x1xi1>
    %53 = vector.broadcast %52 : vector<16x1xi1> to vector<16x32xi1>
    %54 = vector.broadcast %cst_21 : f32 to vector<16x32xf32>
    %55 = arith.select %53, %54, %51 : vector<16x32xi1>, vector<16x32xf32>
    %c15_i32_22 = arith.constant 15 : i32
    %56 = tpu.dynamic_rotate %50 by %c15_i32_22 dim 0 : vector<16x32xf32>, i32 -> vector<16x32xf32>
    %cst_23 = arith.constant 0.000000e+00 : f32
    %57 = vector.shape_cast %14 : vector<16x1xi1> to vector<16x1xi1>
    %58 = vector.broadcast %57 : vector<16x1xi1> to vector<16x32xi1>
    %59 = vector.broadcast %cst_23 : f32 to vector<16x32xf32>
    %60 = arith.select %58, %59, %56 : vector<16x32xi1>, vector<16x32xf32>
    %61 = tpu.concatenate %55, %50, %60 in 1 : vector<16x32xf32>, vector<16x32xf32>, vector<16x32xf32> -> vector<16x96xf32>
    %62 = arith.truncf %61 : vector<16x96xf32> to vector<16x96xbf16>
    %cst_24 = arith.constant dense<0.000000e+00> : vector<16x32xf32>
    %63 = tpu.matmul %62, %7, %cst_24 {dimension_numbers = #tpu.dot_dimension_numbers<[1], [0], [0], [1], [0, 0, 1, 1], [], []>} : vector<16x96xbf16>, vector<96x32xbf16>, vector<16x32xf32> -> vector<16x32xf32>
    %64 = vector.broadcast %18 : vector<16x1xf32> to vector<16x32xf32>
    %65 = arith.mulf %63, %64 : vector<16x32xf32>
    %cst_25 = arith.constant dense<0.000000e+00> : vector<32xf32>
    %66 = vector.multi_reduction <add>, %65, %cst_25 [0] : vector<16x32xf32> to vector<32xf32>
    %67 = vector.shape_cast %66 : vector<32xf32> to vector<1x32xf32>
    %cst_26 = arith.constant 1.250000e-01 : f32
    %68 = vector.broadcast %cst_26 : f32 to vector<1x32xf32>
    %69 = arith.mulf %67, %68 : vector<1x32xf32>
    %70 = vector.broadcast %20 : vector<16x1xf32> to vector<16x32xf32>
    %71 = arith.mulf %63, %70 : vector<16x32xf32>
    %cst_27 = arith.constant dense<0.000000e+00> : vector<32xf32>
    %72 = vector.multi_reduction <add>, %71, %cst_27 [0] : vector<16x32xf32> to vector<32xf32>
    %73 = vector.shape_cast %72 : vector<32xf32> to vector<1x32xf32>
    %cst_28 = arith.constant 1.250000e-01 : f32
    %74 = vector.broadcast %cst_28 : f32 to vector<1x32xf32>
    %75 = arith.mulf %73, %74 : vector<1x32xf32>
    %76 = vector.broadcast %69 : vector<1x32xf32> to vector<2x32xf32>
    %77 = arith.mulf %76, %4 : vector<2x32xf32>
    %cst_29 = arith.constant dense<0.000000e+00> : vector<2xf32>
    %78 = vector.multi_reduction <add>, %77, %cst_29 [1] : vector<2x32xf32> to vector<2xf32>
    %79 = vector.shape_cast %78 : vector<2xf32> to vector<2x1xf32>
    %cst_30 = arith.constant 0.000000e+00 : f32
    %80 = vector.broadcast %cst_30 : f32 to vector<2x1xf32>
    %81 = arith.maximumf %79, %80 : vector<2x1xf32>
    %82 = vector.broadcast %75 : vector<1x32xf32> to vector<2x32xf32>
    %83 = arith.mulf %82, %4 : vector<2x32xf32>
    %cst_31 = arith.constant dense<0.000000e+00> : vector<2xf32>
    %84 = vector.multi_reduction <add>, %83, %cst_31 [1] : vector<2x32xf32> to vector<2xf32>
    %85 = vector.shape_cast %84 : vector<2xf32> to vector<2x1xf32>
    %cst_32 = arith.constant 0.000000e+00 : f32
    %86 = vector.broadcast %cst_32 : f32 to vector<2x1xf32>
    %87 = arith.maximumf %85, %86 : vector<2x1xf32>
    %88 = vector.broadcast %81 : vector<2x1xf32> to vector<2x32xf32>
    %89 = arith.mulf %88, %5 : vector<2x32xf32>
    %cst_33 = arith.constant dense<0.000000e+00> : vector<32xf32>
    %90 = vector.multi_reduction <add>, %89, %cst_33 [0] : vector<2x32xf32> to vector<32xf32>
    %91 = vector.shape_cast %90 : vector<32xf32> to vector<1x32xf32>
    %92 = arith.negf %91 : vector<1x32xf32>
    %93 = math.exp %92 : vector<1x32xf32>
    %cst_34 = arith.constant 1.000000e+00 : f32
    %94 = vector.broadcast %cst_34 : f32 to vector<1x32xf32>
    %95 = arith.addf %94, %93 : vector<1x32xf32>
    %96 = arith.divf %94, %95 : vector<1x32xf32>
    %97 = vector.broadcast %87 : vector<2x1xf32> to vector<2x32xf32>
    %98 = arith.mulf %97, %5 : vector<2x32xf32>
    %cst_35 = arith.constant dense<0.000000e+00> : vector<32xf32>
    %99 = vector.multi_reduction <add>, %98, %cst_35 [0] : vector<2x32xf32> to vector<32xf32>
    %100 = vector.shape_cast %99 : vector<32xf32> to vector<1x32xf32>
    %101 = arith.negf %100 : vector<1x32xf32>
    %102 = math.exp %101 : vector<1x32xf32>
    %cst_36 = arith.constant 1.000000e+00 : f32
    %103 = vector.broadcast %cst_36 : f32 to vector<1x32xf32>
    %104 = arith.addf %103, %102 : vector<1x32xf32>
    %105 = arith.divf %103, %104 : vector<1x32xf32>
    %106 = vector.broadcast %18 : vector<16x1xf32> to vector<16x32xf32>
    %107 = vector.broadcast %96 : vector<1x32xf32> to vector<16x32xf32>
    %108 = arith.mulf %106, %107 : vector<16x32xf32>
    %109 = vector.broadcast %20 : vector<16x1xf32> to vector<16x32xf32>
    %110 = vector.broadcast %105 : vector<1x32xf32> to vector<16x32xf32>
    %111 = arith.mulf %109, %110 : vector<16x32xf32>
    %112 = arith.addf %108, %111 : vector<16x32xf32>
    %113 = arith.mulf %63, %112 : vector<16x32xf32>
    %114 = arith.maximumf %28, %36 : vector<16x16xf32>
    %cst_37 = arith.constant 0.000000e+00 : f32
    %115 = vector.broadcast %cst_37 : f32 to vector<16x16xf32>
    %116 = tpu.concatenate %114, %115 in 1 : vector<16x16xf32>, vector<16x16xf32> -> vector<16x32xf32>
    %117 = arith.addf %113, %116 : vector<16x32xf32>
    %c0_38 = arith.constant 0 : index
    %c0_39 = arith.constant 0 : index
    %118 = vector.load %arg3[%c0_38, %c0_39] : memref<16x32xf32, #tpu.memory_space<vmem>>, vector<16x32xf32>
    tpu.vector_store %arg3[%c0_38, %c0_39], %117 {strides = array<i32>} : memref<16x32xf32, #tpu.memory_space<vmem>>, vector<16x32xf32>,
    return
  }
}

</mosaic_0001>

<bundles_post_ra>
// kernel: wrn_block_pallas.1
= control target key start
LH: loop header
LB: loop body
LE: loop exit
PB: predicated region body
PF: predicated region fallthrough
CT: control target
= control target key end

     0   :  { %v40_v3 = vlaneseq  ;;  %v531_v12 = vmov 0.0   ;;  %vm532_vm0 = vmmov 0   ;;  %s533_s29 = smov 16   ;;  %s725_s0 = inlined_call_operand.vmem [shape: f32[2,16,16], index: 0, kind: input, shape index: {}]   ;;  %s726_s1 = inlined_call_operand.vmem [shape: f32[8,32], index: 1, kind: input, shape index: {}]   ;;  %s727_s2 = inlined_call_operand.vmem [shape: bf16[144,32], index: 2, kind: input, shape index: {}]   ;;  %s728_s3 = inlined_call_operand.hbm [shape: f32[16,32], index: 3, kind: output, shape index: {}]  }
   0x1   :  { %v408_v0 = vld [vmem:[%s726_s1] ss:$0 sm:$0xff]  ;;  %v409_v1 = vld [vmem:[%s726_s1 + $0x1] ss:$0 sm:$0xff]  ;;  %v58_v4 = vld [vmem:[%s725_s0 + $0x8] sm:$0xff]  ;;  %438 = vmatprep.subr.bf16.mxu0 %v531_v12  ;;  %448 = vmatprep.subr.bf16.mxu1 %v531_v12 }
   0x2   :  { %v57_v2 = vld [vmem:[%s725_s0] sm:$0xff]  ;;  %v410_v5 = vld [vmem:[%s725_s0 + $0x10] sm:$0xff]  ;;  %v411_v6 = vld [vmem:[%s725_s0 + $0x18] sm:$0xff]  ;;  %v64_v10 = vmul.f32 %v408_v0, %v58_v4  ;;  %v577_v11 = vshrl.u32 %v40_v3, 7  ;;  %444 = vmatprep.mubr.msk.bf16.mxu0 %vm532_vm0, %v531_v12  ;;  %460 = vmatprep.mubr.msk.bf16.mxu1 %vm532_vm0, %v531_v12 }
   0x3   :  { %v63_v7 = vmul.f32 %v408_v0, %v57_v2  ;;  %v76_v8 = vmul.f32 %v410_v5, %v408_v0  ;;  %v77_v9 = vmul.f32 %v411_v6, %v408_v0  ;;  %v492_v13 = vld [vmem:[%s727_s2 + $0x10] sm:$0xff]   ;;  %v493_v19 = vld [vmem:[%s727_s2 + $0x8] sm:$0xff]   ;;  %v494_v29 = vld [vmem:[%s727_s2] sm:$0xff]  }
   0x4   :  { %v70_v17 = vadd.f32 %v409_v1, %v64_v10  ;;  %v589_v18 = vadd.s32 8, %v577_v11  ;;  %439 = vmatpush3.bf16.msra.mxu0 %v492_v13  ;;  %v43_v21 = vand.u32 7, %v577_v11  ;;  %vm84_vm2 = vcmp.lt.s32.totalorder %v577_v11, 7 }
   0x5   :  { %v69_v14 = vadd.f32 %v409_v1, %v63_v7  ;;  %v584_v15 = vadd.f32 %v409_v1, %v76_v8  ;;  %v586_v16 = vadd.f32 %v409_v1, %v77_v9  ;;  %440 = vmatprep.subr.bf16.mxu0 %v531_v12 }
   0x6   :  { %v600_v24 = vmax.f32 %v70_v17, 0.0  ;;  %v44_v25 = vand.u32 7, %v589_v18  ;;  %vm612_vm1 = vcmp.eq.s32.totalorder %v43_v21, 7 }
   0x7   :  { %v594_v20 = vmax.f32 %v69_v14, 0.0  ;;  %v80_v22 = vmax.f32 %v584_v15, 0.0  ;;  %v81_v23 = vmax.f32 %v586_v16, 0.0 }
   0x8   :  { %441 = vmatpush3.bf16.msra.mxu0 %v493_v19  ;;  %vm622_vm3 = vcmp.eq.s32.totalorder %v44_v25, 7  ;;  %v83_v31 = vrot.slane %v600_v24, 1 }
   0x9   :  { %v82_v26 = vrot.slane %v594_v20, 1  ;;  %v472_v27 = vpack.i.bf16 %v81_v23, %v80_v22  ;;  %442 = vmatprep.subr.bf16.mxu0 %v531_v12 }
   0xb   :  { %473 = vrot.lane.b32.xlu0 %v472_v27, %s533_s29  ;;  %v85_v32 = vsel %vm84_vm2, %v82_v26, %v83_v31  ;;  %v86_v33 = vsel %vm84_vm2, %v83_v31, %v82_v26 }
   0xc   :  { %v91_v34 = vsel %vm612_vm1, 0.0, %v85_v32  ;;  %v92_v35 = vsel %vm622_vm3, 0.0, %v86_v33  ;;  %443 = vmatpush3.bf16.msra.mxu0 %v494_v29 }
   0xd   :  { %v477_v36 = vpack.i.bf16 %v92_v35, %v91_v34 }
   0xe   :  { %8 = vsyncpa [#allocation3], 0  ;;  %s534_s30 = smov 32   ;;  %vm109_vm4 = vcmask 130048   ;;  %vm112_vm5 = vcmask 261120   ;;  %vm134_vm6 = vcmask 392192  }
   0xf   :  { %478 = vrot.lane.b32.xlu0 %v477_v36, %s534_s30  ;;  %v495_v48 = vld [vmem:[%s727_s2 + $0x40] sm:$0xff]   ;;  %v496_v49 = vld [vmem:[%s727_s2 + $0x38] sm:$0xff]   ;;  %v497_v50 = vld [vmem:[%s727_s2 + $0x30] sm:$0xff]   ;;  %vm195_vm7 = vcmp.lt.s32.totalorder %v577_v11, 1  ;;  %vm45_vm8 = vcmp.eq.s32.totalorder %v43_v21, 0  ;;  %vm46_vm9 = vcmp.eq.s32.totalorder %v44_v25, 0 }
  0x10   :  { %449 = vmatpush3.bf16.msra.mxu1 %v495_v48  ;;  %v498_v51 = vld [vmem:[%s727_s2 + $0x28] sm:$0xff]   ;;  %v416_v52 = vld [vmem:[%s726_s1 + $0x2] ss:$0 sm:$0xff]  ;;  %v417_v53 = vld [vmem:[%s726_s1 + $0x3] ss:$0 sm:$0xff]  ;;  %vm228_vm10 = vcmask 523264  }
  0x11   :  { %450 = vmatprep.subr.bf16.mxu1 %v531_v12  ;;  %v499_v55 = vld [vmem:[%s727_s2 + $0x20] sm:$0xff]   ;;  %v500_v60 = vld [vmem:[%s727_s2 + $0x18] sm:$0xff]   ;;  %s535_s2 = smov 64   ;;  %vm268_vm11 = vcmask 785408   ;;  %vm338_vm12 = vcmask 254976  }
  0x14   :  { %451 = vmatpush3.bf16.msra.mxu1 %v496_v49 }
  0x15   :  { %452 = vmatprep.subr.bf16.mxu1 %v531_v12 }
  0x18   :  { %453 = vmatpush3.bf16.msra.mxu1 %v497_v50 }
  0x19   :  { %454 = vmatprep.subr.bf16.mxu1 %v531_v12 }
  0x1c   :  { %455 = vmatpush3.bf16.msra.mxu1 %v498_v51 }
  0x1d   :  { %456 = vmatprep.subr.bf16.mxu1 %v531_v12 }
  0x20   :  { %457 = vmatpush3.bf16.msra.mxu1 %v499_v55 }
  0x21   :  { %458 = vmatprep.subr.bf16.mxu1 %v531_v12 }
  0x24   :  { %459 = vmatpush3.bf16.msra.mxu1 %v500_v60 }
  0x7d   :  { %v474_v37 = vpop.permute.xlu0 %473 }
  0x7e   :  { %v476_v38 = vunpack.i.h.bf16 %v474_v37  ;;  %v475_v39 = vunpack.i.l.bf16 %v474_v37 }
  0x80   :  { %v110_v43 = vsel %vm109_vm4, %v594_v20, %v475_v39  ;;  %v111_v44 = vsel %vm109_vm4, %v600_v24, %v476_v38 }
  0x81   :  { %v479_v40 = vpop.permute.xlu0 %478 }
  0x82   :  { %v481_v41 = vunpack.i.h.bf16 %v479_v40  ;;  %v480_v42 = vunpack.i.l.bf16 %v479_v40 }
  0x84   :  { %v114_v45 = vsel %vm112_vm5, %v111_v44, %v481_v41  ;;  %v113_v46 = vsel %vm112_vm5, %v110_v43, %v480_v42 }
  0x85   :  { %v115_v47 = vpack.c.bf16 %v114_v45, %v113_v46 }
  0x87   :  { %445 = vmatmul.mubr.msk.bf16.vlgmr.msra.gmra.mxu0 %vm134_vm6, %v115_v47 }
 0x147   :  { %v172_v54 = vpop.f32.mrf.mxu0 }
 0x148   :  { %v183_v56 = vmul.f32 %v416_v52, %v172_v54 }
 0x149   :  { %v446_v57 = vpop.f32.mrf.mxu0 }
 0x14a   :  { %v189_v58 = vadd.f32 %v417_v53, %v183_v56  ;;  %v20_v56 = vld [vmem:[%s726_s1 + $0x4] sm:$0x3] }
 0x14b   :  { %v175_v59 = vpop.f32.mrf.mxu0 }
 0x14c   :  { %v184_v61 = vmul.f32 %v416_v52, %v175_v59  ;;  %v191_v62 = vmax.f32 %v189_v58, 0.0 }
 0x14d   :  { %v447_v63 = vpop.f32.mrf.mxu0 }
 0x14e   :  { %v190_v0 = vadd.f32 %v417_v53, %v184_v61  ;;  %v193_v2 = vrot.slane %v191_v62, 7  ;;  %v204_v3 = vrot.slane %v191_v62, 1 }
 0x150   :  { %v192_v1 = vmax.f32 %v190_v0, 0.0  ;;  %v21_v0 = vld [vmem:[%s726_s1 + $0x6] sm:$0x3]  ;;  %s536_s1 = smov [#allocation2]  }
 0x151   :  { %s397_s24 = sshll.u32 %s536_s1, 4  ;;  %s398_s24 = int_to_ptr.vmem [resolvable:$true] %s397_s24 }
 0x152   :  { %v194_v4 = vrot.slane %v192_v1, 7  ;;  %v205_v5 = vrot.slane %v192_v1, 1  ;;  %v482_v6 = vpack.i.bf16 %v192_v1, %v191_v62  ;;  %s509_s25 = scalar_lea.vmem %s398_s24, 256  ;;  %p514_p1 = scmp.lt.s32.totalorder %s398_s24, %s398_s24 }
 0x153   :  { %p510_p0 = scmp.ne.s32.totalorder %s398_s24, %s509_s25  ;;  %p515_p2 = scmp.lt.s32.totalorder %s509_s25, %s509_s25 }
 0x154   :  { %483 = vrot.lane.b32.xlu1 %v482_v6, %s534_s30  ;;  %v206_v7 = vsel %vm84_vm2, %v204_v3, %v205_v5  ;;  %v207_v8 = vsel %vm84_vm2, %v205_v5, %v204_v3  ;;  %v196_v9 = vsel %vm195_vm7, %v193_v2, %v194_v4  ;;  %v197_v10 = vsel %vm195_vm7, %v194_v4, %v193_v2 }
 0x155   :  { %v208_v12 = vsel %vm612_vm1, 0.0, %v206_v7  ;;  %v209_v13 = vsel %vm622_vm3, 0.0, %v207_v8  ;;  %v202_v29 = vsel %vm45_vm8, 0.0, %v197_v10  ;;  %v203_v28 = vsel %vm46_vm9, 0.0, %v196_v9  ;;  %p516_p3 = por %p515_p2, %p514_p1 }
 0x156   :  { %v487_v14 = vpack.i.bf16 %v209_v13, %v208_v12 }
 0x157   :  { %p517_p4 = pnand %p516_p3, %p510_p0 }
 0x158   :  { %488 = vrot.lane.b32.xlu1 %v487_v14, %s535_s2 }
 0x1c6   :  { %v484_v17 = vpop.permute.xlu1 %483 }
 0x1c7   :  { %v486_v19 = vunpack.i.h.bf16 %v484_v17  ;;  %v485_v26 = vunpack.i.l.bf16 %v484_v17 }
 0x1c9   :  { %v226_v30 = vsel %vm112_vm5, %v202_v29, %v485_v26  ;;  %v227_v33 = vsel %vm112_vm5, %v203_v28, %v486_v19 }
 0x1ca   :  { %v489_v27 = vpop.permute.xlu1 %488 }
 0x1cb   :  { %v491_v31 = vunpack.i.h.bf16 %v489_v27  ;;  %v490_v32 = vunpack.i.l.bf16 %v489_v27 }
 0x1cd   :  { %v229_v34 = vsel %vm228_vm10, %v226_v30, %v490_v32  ;;  %v230_v35 = vsel %vm228_vm10, %v227_v33, %v491_v31 }
 0x1ce   :  { %v231_v11 = vpack.c.bf16 %v230_v35, %v229_v34 }
 0x1d0   :  { %461 = vmatmul.mubr.msk.bf16.vlgmr.msra.gmra.mxu1 %vm268_vm11, %v231_v11 }
 0x290   :  { %v688_v21 = vpop.f32.mrf.mxu1 }
 0x291   :  { %v325_v18 = vmul.f32 0.0, %v688_v21  ;;  %v315_v42 = vsel %vm112_vm5, %v688_v21, 0.0 }
 0x292   :  { %v462_v25 = vpop.f32.mrf.mxu1 }
 0x293   :  { %v327_v38 = vsel %vm112_vm5, %v325_v18, 0.0  ;;  %v384_v25 = vmax.f32 %v594_v20, %v80_v22 }
 0x294   :  { %v691_v36 = vpop.f32.mrf.mxu1 }
 0x295   :  { %v314_v37 = vmul.f32 0.0, %v691_v36  ;;  %v328_v39 = vsel %vm112_vm5, %v691_v36, 0.0 }
 0x296   :  { %v329_v40 = vadd.f32 %v328_v39, %v327_v38  ;;  %v463_v41 = vpop.f32.mrf.mxu1  ;;  %v385_v39 = vmax.f32 %v600_v24, %v81_v23 }
 0x297   :  { %v316_v43 = vsel %vm112_vm5, %v314_v37, 0.0 }
 0x298   :  { %v317_v44 = vadd.f32 %v316_v43, %v315_v42  ;;  %v330_v45 = vrot.slane %v329_v40, 4  ;;  %v386_v42 = vsel %vm109_vm4, %v384_v25, 0.0 }
 0x29a   :  { %v318_v46 = vrot.slane %v317_v44, 4  ;;  %v331_v47 = vadd.f32 %v330_v45, %v329_v40  ;;  %v387_v45 = vsel %vm109_vm4, %v385_v39, 0.0 }
 0x29c   :  { %v319_v48 = vadd.f32 %v318_v46, %v317_v44  ;;  %v332_v49 = vrot.slane %v331_v47, 2 }
 0x29e   :  { %v333_v50 = vadd.f32 %v332_v49, %v331_v47  ;;  %v320_v51 = vrot.slane %v319_v48, 2 }
 0x2a0   :  { %v334_v52 = vrot.slane %v333_v50, 1  ;;  %v321_v53 = vadd.f32 %v320_v51, %v319_v48 }
 0x2a2   :  { %v335_v54 = vadd.f32 %v334_v52, %v333_v50  ;;  %v322_v55 = vrot.slane %v321_v53, 1 }
 0x2a4   :  { %v336_v57 = vmul.f32 0.125, %v335_v54  ;;  %v323_v58 = vadd.f32 %v322_v55, %v321_v53 }
 0x2a6   :  { %v343_v59 = vmul.f32 %v336_v57, %v20_v56  ;;  %v324_v60 = vmul.f32 0.125, %v323_v58 }
 0x2a8   :  { %v344_v61 = vsel %vm338_vm12, %v343_v59, 0.0  ;;  %v337_v62 = vmul.f32 %v324_v60, %v20_v56 }
 0x2a9   :  { %345 = vadd.xlane.f32.xlu1 %v344_v61 }
 0x2aa   :  { %v339_v63 = vsel %vm338_vm12, %v337_v62, 0.0 }
 0x2ab   :  { %340 = vadd.xlane.f32.xlu0 %v339_v63 }
 0x332   :  { %v346_v1 = vpop.xlane.xlu1 %345 }
 0x333   :  { %v347_v2 = vmax.f32 %v346_v1, 0.0 }
 0x334   :  { %v341_v3 = vpop.xlane.xlu0 %340 }
 0x335   :  { %v362_v4 = vmul.f32 %v347_v2, %v21_v0  ;;  %v342_v5 = vmax.f32 %v341_v3, 0.0 }
 0x337   :  { %v363_v6 = vsel %vm338_vm12, %v362_v4, 0.0  ;;  %v348_v7 = vmul.f32 %v342_v5, %v21_v0 }
 0x338   :  { %v364_v8 = vrot.slane %v363_v6, 4 }
 0x339   :  { %v349_v9 = vsel %vm338_vm12, %v348_v7, 0.0 }
 0x33a   :  { %v365_v10 = vadd.f32 %v364_v8, %v363_v6  ;;  %v350_v12 = vrot.slane %v349_v9, 4 }
 0x33c   :  { %v366_v13 = vrot.slane %v365_v10, 2  ;;  %v351_v14 = vadd.f32 %v350_v12, %v349_v9 }
 0x33e   :  { %v367_v17 = vadd.f32 %v366_v13, %v365_v10  ;;  %v352_v19 = vrot.slane %v351_v14, 2 }
 0x340   :  { %v368_v26 = vrot.slane %v367_v17, 1  ;;  %v353_v27 = vadd.f32 %v352_v19, %v351_v14 }
 0x342   :  { %v369_v29 = vadd.f32 %v368_v26, %v367_v17  ;;  %v354_v28 = vrot.slane %v353_v27, 1 }
 0x344   :  { %v426_v31 = vmul.f32 -1.442695, %v369_v29  ;;  %v355_v32 = vadd.f32 %v354_v28, %v353_v27 }
 0x346   :  { %501 = vpow2.f32 %v426_v31  ;;  %v425_v30 = vmul.f32 -1.442695, %v355_v32 }
 0x348   :  { %503 = vpow2.f32 %v425_v30 }
 0x353   :  { %v502_v33 = vpop.eup %501 }
 0x354   :  { %v373_v34 = vadd.f32 1.0, %v502_v33 }
 0x355   :  { %v504_v35 = vpop.eup %503 }
 0x356   :  { %505 = vrcp.f32 %v373_v34  ;;  %v359_v11 = vadd.f32 1.0, %v504_v35 }
 0x358   :  { %507 = vrcp.f32 %v359_v11 }
 0x363   :  { %v506_v18 = vpop.eup %505 }
 0x364   :  { %v378_v37 = vmul.f32 0.0, %v506_v18 }
 0x365   :  { %v508_v38 = vpop.eup %507 }
 0x366   :  { %v377_v40 = vmul.f32 0.0, %v508_v38  ;;  %v380_v41 = vadd.f32 %v508_v38, %v378_v37 }
 0x368   :  { %v381_v43 = vadd.f32 %v506_v18, %v377_v40  ;;  %v382_v44 = vmul.f32 %v380_v41, %v688_v21 }
 0x36a   :  { %v383_v15 = vmul.f32 %v381_v43, %v691_v36  ;;  %v388_v20 = vadd.f32 %v386_v42, %v382_v44 }
 0x36c   :  { %v389_v22 = vadd.f32 %v387_v45, %v383_v15  ;;  %390 = vst.msk [vmem:[#allocation2] sm:$0xff] %vm112_vm5, %v388_v20 }
 0x36e   :  { %391 = vst.msk [vmem:[#allocation2 + $0x8] sm:$0xff] %vm112_vm5, %v389_v22 }
 0x36f   :  { %520 = shalt.err (!%p517_p4)
}
 0x370   :  { %s537_s0 = smov 128   ;;  %s538_s26 = smov 8  }
 0x371   :  { %403 = dma.vmem_to_hbm [thread:$0]  %s398_s24, 256, %s728_s3, [#allocation3], %s537_s0, %s537_s0, %s538_s26  }
 0x372   :  { %529 = dma.done.wait [#allocation3], 256  }
 0x373   :  { %530 = vsyncadd [#allocation3], 4294967040 }
 0x374   :  { %407 = vsyncpa [#allocation3], 1 }

</bundles_post_ra>
